<compile_context>
chip_gen: v7x
topology: tpu7x:2x2x1
jax: 0.10.0
libtpu: 0.0.40
codegen_flags: <defaults>
</compile_context>

<pallas_src>
import jax
import jax.numpy as jnp
from jax.experimental import pallas as pl
from jax.experimental.pallas import tpu as pltpu

H1, H2 = 64, 32
TILE_B = 1024  # batch tile (rows per grid step); multiple of 128 for the lane-dense output


def _round_up(v, m):
    return ((v + m - 1) // m) * m


def _mlp_kernel(x_ref, w1_ref, b1_ref, w2_ref, b2_ref, w3_ref, b3_ref, o_ref):
    """Fused forward on one (TILE_B, input_size) batch tile:
    relu(x@W1+b1) -> relu(.@W2+b2) -> sigmoid(W3-reduce + b3), stored lane-dense."""
    # Cast x at the MXU input only (VPU op hidden under the DMA); keep HBM stream f32.
    x = x_ref[...].astype(jnp.bfloat16)  # (TILE_B, IN)

    # fc1 + ReLU: bf16 MXU inputs, f32 accumulate, f32 elementwise.
    h1 = jnp.dot(x, w1_ref[...], preferred_element_type=jnp.float32) + b1_ref[...]
    h1 = jnp.maximum(h1, 0.0)

    # fc2 + ReLU: cast the activation only at the MXU input, keep f32 math after.
    h2 = jnp.dot(h1.astype(jnp.bfloat16), w2_ref[...],
                 preferred_element_type=jnp.float32) + b2_ref[...]
    h2 = jnp.maximum(h2, 0.0)  # (TILE_B, H2)

    # fc3 (out_features == 1): lane-dense epilogue. Transpose h2 (XLU), VPU multiply
    # against the (H2, 1) weight column, reduce over features -> (1, TILE_B) row.
    h2t = h2.T                                                    # (H2, TILE_B)
    h3 = jnp.sum(h2t * w3_ref[...], axis=0, keepdims=True) + b3_ref[...]  # (1, TILE_B)
    o_ref[...] = jax.nn.sigmoid(h3).astype(o_ref.dtype)


def fully_connected_nn(x, params, *, tile_b=TILE_B):
    """x: (B, input_size) float32. params: PyTorch-layout dict
    (w*: (out_features, in_features), b*: (out_features,)). Returns (B, 1) float32."""
    B, input_size = x.shape

    # Parameter prep (tiny, one-time): transpose MXU-fed weights to (in, out), cast to
    # bf16; keep biases and the final (VPU) weight column in f32.
    w1 = params["w1"].T.astype(jnp.bfloat16)             # (in, 64)
    w2 = params["w2"].T.astype(jnp.bfloat16)             # (64, 32)
    w3 = params["w3"].T.astype(jnp.float32)               # (32, 1) column
    b1 = params["b1"].reshape(1, H1).astype(jnp.float32)
    b2 = params["b2"].reshape(1, H2).astype(jnp.float32)
    b3 = params["b3"].reshape(1, 1).astype(jnp.float32)

    # Clamp the tile for small batches (grid=1, full-dim output block); otherwise keep
    # the requested lane-dense tile (multiple of 128). No wrapper-side pad/copy of x:
    # the ragged final tile is handled by the cdiv grid (partial block load, rows
    # beyond B are garbage and sliced off below).
    tile_eff = min(tile_b, _round_up(B, 8))
    n_tiles = pl.cdiv(B, tile_eff)

    out2d = pl.pallas_call(
        _mlp_kernel,
        out_shape=jax.ShapeDtypeStruct((n_tiles, tile_eff), jnp.float32),
        grid=(n_tiles,),
        in_specs=[
            # x: streamed batch tiles along the grid axis (native dtype, cast in-kernel).
            pl.BlockSpec((tile_eff, input_size), lambda i: (i, 0)),
            # Weights / biases: same whole-array block every step -> VMEM-resident.
            pl.BlockSpec((input_size, H1), lambda i: (0, 0)),
            pl.BlockSpec((1, H1), lambda i: (0, 0)),
            pl.BlockSpec((H1, H2), lambda i: (0, 0)),
            pl.BlockSpec((1, H2), lambda i: (0, 0)),
            pl.BlockSpec((H2, 1), lambda i: (0, 0)),
            pl.BlockSpec((1, 1), lambda i: (0, 0)),
        ],
        # Lane-dense output: one (1, tile_eff) row per batch tile.
        out_specs=pl.BlockSpec((1, tile_eff), lambda i: (i, 0)),
        compiler_params=pltpu.CompilerParams(
            dimension_semantics=("parallel",),
        ),
    )(x, w1, b1, w2, b2, w3, b3)

    # Reassemble (n_tiles, tile_eff) -> (B, 1), dropping any ragged-tile padding rows.
    return out2d.reshape(-1)[:B].reshape(B, 1)


def init_params(key, input_size):
    """Deterministic init matching nn.Linear parameter shapes (out_features, in_features)."""
    k1, k2, k3, k4, k5, k6 = jax.random.split(key, 6)

    def lin(kw, kb, fan_in, fan_out):
        bound = 1.0 / jnp.sqrt(fan_in)
        w = jax.random.uniform(kw, (fan_out, fan_in), jnp.float32, -bound, bound)
        b = jax.random.uniform(kb, (fan_out,), jnp.float32, -bound, bound)
        return w, b

    w1, b1 = lin(k1, k2, input_size, H1)
    w2, b2 = lin(k3, k4, H1, H2)
    w3, b3 = lin(k5, k6, H2, 1)
    return {"w1": w1, "b1": b1, "w2": w2, "b2": b2, "w3": w3, "b3": b3}


if __name__ == "__main__":
    key = jax.random.PRNGKey(0)
    kx, kp, kx2 = jax.random.split(key, 3)

    input_size = 16
    params = init_params(kp, input_size)

    def reference(xv, p):
        h = jnp.maximum(xv @ p["w1"].T + p["b1"], 0.0)
        h = jnp.maximum(h @ p["w2"].T + p["b2"], 0.0)
        return jax.nn.sigmoid(h @ p["w3"].T + p["b3"])

    # Small single-tile run (grid = 1, clamped tile).
    batch = 8
    x = jax.random.normal(kx, (batch, input_size), jnp.float32)
    out = jax.block_until_ready(fully_connected_nn(x, params))
    ref = reference(x, params)
    assert out.shape == (batch, 1)
    # bf16 MXU inputs -> compare against the f32 reference with a relaxed tolerance.
    assert jnp.allclose(out, ref, atol=2e-2, rtol=2e-2), "mismatch vs reference (single tile)"

    # Multi-tile run (grid = 3, ragged final tile): exercises the batch grid, partial
    # last x block, resident weights, and the lane-dense output reassembly.
    batch2 = 2 * TILE_B + 256
    x2 = jax.random.normal(kx2, (batch2, input_size), jnp.float32)
    out2 = jax.block_until_ready(fully_connected_nn(x2, params))
    ref2 = reference(x2, params)
    assert out2.shape == (batch2, 1)
    assert jnp.allclose(out2, ref2, atol=2e-2, rtol=2e-2), "mismatch vs reference (multi tile)"

    print("KERNEL_OK")
</pallas_src>

<mosaic_0001>
module attributes {stable_mosaic.version = 11 : i64} {
  func.func @_mlp_kernel(%arg0: i32, %arg1: memref<8x16xf32, #tpu.memory_space<vmem>>, %arg2: memref<16x64xbf16, #tpu.memory_space<vmem>>, %arg3: memref<1x64xf32, #tpu.memory_space<vmem>>, %arg4: memref<64x32xbf16, #tpu.memory_space<vmem>>, %arg5: memref<1x32xf32, #tpu.memory_space<vmem>>, %arg6: memref<32x1xf32, #tpu.memory_space<vmem>>, %arg7: memref<1x1xf32, #tpu.memory_space<vmem>>, %arg8: memref<1x8xf32, #tpu.memory_space<vmem>>) attributes {dimension_semantics = [#tpu.dimension_semantics<parallel>], iteration_bounds = array<i64: 1>, scalar_prefetch = 0 : i64, scratch_operands = 0 : i64, tpu.core_type = #tpu.core_type<tc>, window_params = [{transform_indices = @transform_0, window_bounds = array<i64: 8, 16>}, {pipeline_mode = #tpu.pipeline_mode<synchronous>, transform_indices = @transform_1, window_bounds = array<i64: 16, 64>}, {pipeline_mode = #tpu.pipeline_mode<synchronous>, transform_indices = @transform_2, window_bounds = array<i64: 1, 64>}, {pipeline_mode = #tpu.pipeline_mode<synchronous>, transform_indices = @transform_3, window_bounds = array<i64: 64, 32>}, {pipeline_mode = #tpu.pipeline_mode<synchronous>, transform_indices = @transform_4, window_bounds = array<i64: 1, 32>}, {pipeline_mode = #tpu.pipeline_mode<synchronous>, transform_indices = @transform_5, window_bounds = array<i64: 32, 1>}, {pipeline_mode = #tpu.pipeline_mode<synchronous>, transform_indices = @transform_6, window_bounds = array<i64: 1, 1>}, {transform_indices = @transform_7, window_bounds = array<i64: 1, 8>}]} {
    %c0 = arith.constant 0 : index
    %c0_0 = arith.constant 0 : index
    %0 = vector.load %arg1[%c0, %c0_0] : memref<8x16xf32, #tpu.memory_space<vmem>>, vector<8x16xf32>
    %1 = arith.truncf %0 : vector<8x16xf32> to vector<8x16xbf16>
    %c0_1 = arith.constant 0 : index
    %c0_2 = arith.constant 0 : index
    %2 = vector.load %arg2[%c0_1, %c0_2] : memref<16x64xbf16, #tpu.memory_space<vmem>>, vector<16x64xbf16>
    %cst = arith.constant dense<0.000000e+00> : vector<8x64xf32>
    %3 = tpu.matmul %1, %2, %cst {dimension_numbers = #tpu.dot_dimension_numbers<[1], [0], [0], [1], [0, 0, 1, 1], [], []>} : vector<8x16xbf16>, vector<16x64xbf16>, vector<8x64xf32> -> vector<8x64xf32>
    %c0_3 = arith.constant 0 : index
    %c0_4 = arith.constant 0 : index
    %4 = vector.load %arg3[%c0_3, %c0_4] : memref<1x64xf32, #tpu.memory_space<vmem>>, vector<1x64xf32>
    %5 = vector.broadcast %4 : vector<1x64xf32> to vector<8x64xf32>
    %6 = arith.addf %3, %5 : vector<8x64xf32>
    %cst_5 = arith.constant 0.000000e+00 : f32
    %7 = vector.broadcast %cst_5 : f32 to vector<8x64xf32>
    %8 = arith.maximumf %6, %7 : vector<8x64xf32>
    %9 = arith.truncf %8 : vector<8x64xf32> to vector<8x64xbf16>
    %c0_6 = arith.constant 0 : index
    %c0_7 = arith.constant 0 : index
    %10 = vector.load %arg4[%c0_6, %c0_7] : memref<64x32xbf16, #tpu.memory_space<vmem>>, vector<64x32xbf16>
    %cst_8 = arith.constant dense<0.000000e+00> : vector<8x32xf32>
    %11 = tpu.matmul %9, %10, %cst_8 {dimension_numbers = #tpu.dot_dimension_numbers<[1], [0], [0], [1], [0, 0, 1, 1], [], []>} : vector<8x64xbf16>, vector<64x32xbf16>, vector<8x32xf32> -> vector<8x32xf32>
    %c0_9 = arith.constant 0 : index
    %c0_10 = arith.constant 0 : index
    %12 = vector.load %arg5[%c0_9, %c0_10] : memref<1x32xf32, #tpu.memory_space<vmem>>, vector<1x32xf32>
    %13 = vector.broadcast %12 : vector<1x32xf32> to vector<8x32xf32>
    %14 = arith.addf %11, %13 : vector<8x32xf32>
    %cst_11 = arith.constant 0.000000e+00 : f32
    %15 = vector.broadcast %cst_11 : f32 to vector<8x32xf32>
    %16 = arith.maximumf %14, %15 : vector<8x32xf32>
    %17 = tpu.transpose %16, [1, 0] : vector<8x32xf32> -> vector<32x8xf32>
    %c0_12 = arith.constant 0 : index
    %c0_13 = arith.constant 0 : index
    %18 = vector.load %arg6[%c0_12, %c0_13] : memref<32x1xf32, #tpu.memory_space<vmem>>, vector<32x1xf32>
    %19 = vector.broadcast %18 : vector<32x1xf32> to vector<32x8xf32>
    %20 = arith.mulf %17, %19 : vector<32x8xf32>
    %cst_14 = arith.constant dense<0.000000e+00> : vector<8xf32>
    %21 = vector.multi_reduction <add>, %20, %cst_14 [0] : vector<32x8xf32> to vector<8xf32>
    %22 = vector.shape_cast %21 : vector<8xf32> to vector<1x8xf32>
    %c0_15 = arith.constant 0 : index
    %c0_16 = arith.constant 0 : index
    %23 = vector.load %arg7[%c0_15, %c0_16] : memref<1x1xf32, #tpu.memory_space<vmem>>, vector<1x1xf32>
    %24 = vector.broadcast %23 : vector<1x1xf32> to vector<1x8xf32>
    %25 = arith.addf %22, %24 : vector<1x8xf32>
    %26 = arith.negf %25 : vector<1x8xf32>
    %27 = math.exp %26 : vector<1x8xf32>
    %cst_17 = arith.constant 1.000000e+00 : f32
    %28 = vector.broadcast %cst_17 : f32 to vector<1x8xf32>
    %29 = arith.addf %28, %27 : vector<1x8xf32>
    %30 = arith.divf %28, %29 : vector<1x8xf32>
    %c0_18 = arith.constant 0 : index
    %c0_19 = arith.constant 0 : index
    %31 = vector.load %arg8[%c0_18, %c0_19] : memref<1x8xf32, #tpu.memory_space<vmem>>, vector<1x8xf32>
    tpu.vector_store %arg8[%c0_18, %c0_19], %30 {strides = array<i32>} : memref<1x8xf32, #tpu.memory_space<vmem>>, vector<1x8xf32>,
    return
  }
  func.func @transform_0(%arg0: i32) -> (i32, i32) {
    %c0_i32 = arith.constant 0 : i32
    %c0_i32_0 = arith.constant 0 : i32
    return %arg0, %c0_i32 : i32, i32
  }
  func.func @transform_1(%arg0: i32) -> (i32, i32) {
    %c0_i32 = arith.constant 0 : i32
    %c0_i32_0 = arith.constant 0 : i32
    %c0_i32_1 = arith.constant 0 : i32
    return %c0_i32, %c0_i32_0 : i32, i32
  }
  func.func @transform_2(%arg0: i32) -> (i32, i32) {
    %c0_i32 = arith.constant 0 : i32
    %c0_i32_0 = arith.constant 0 : i32
    %c0_i32_1 = arith.constant 0 : i32
    return %c0_i32, %c0_i32_0 : i32, i32
  }
  func.func @transform_3(%arg0: i32) -> (i32, i32) {
    %c0_i32 = arith.constant 0 : i32
    %c0_i32_0 = arith.constant 0 : i32
    %c0_i32_1 = arith.constant 0 : i32
    return %c0_i32, %c0_i32_0 : i32, i32
  }
  func.func @transform_4(%arg0: i32) -> (i32, i32) {
    %c0_i32 = arith.constant 0 : i32
    %c0_i32_0 = arith.constant 0 : i32
    %c0_i32_1 = arith.constant 0 : i32
    return %c0_i32, %c0_i32_0 : i32, i32
  }
  func.func @transform_5(%arg0: i32) -> (i32, i32) {
    %c0_i32 = arith.constant 0 : i32
    %c0_i32_0 = arith.constant 0 : i32
    %c0_i32_1 = arith.constant 0 : i32
    return %c0_i32, %c0_i32_0 : i32, i32
  }
  func.func @transform_6(%arg0: i32) -> (i32, i32) {
    %c0_i32 = arith.constant 0 : i32
    %c0_i32_0 = arith.constant 0 : i32
    %c0_i32_1 = arith.constant 0 : i32
    return %c0_i32, %c0_i32_0 : i32, i32
  }
  func.func @transform_7(%arg0: i32) -> (i32, i32) {
    %c0_i32 = arith.constant 0 : i32
    %c0_i32_0 = arith.constant 0 : i32
    return %arg0, %c0_i32 : i32, i32
  }
}

</mosaic_0001>

<bundles_post_ra>
// kernel: tpu_custom_call.1
= control target key start
LH: loop header
LB: loop body
LE: loop exit
PB: predicated region body
PF: predicated region fallthrough
CT: control target
= control target key end

     0   :  { %s453_s0 = inlined_call_operand.vmem [shape: f32[8,16], index: 0, kind: input, shape index: {}]   ;;  %s454_s1 = inlined_call_operand.vmem [shape: bf16[16,64], index: 1, kind: input, shape index: {}]   ;;  %s455_s2 = inlined_call_operand.vmem [shape: f32[1,64], index: 2, kind: input, shape index: {}]   ;;  %s456_s3 = inlined_call_operand.vmem [shape: bf16[64,32], index: 3, kind: input, shape index: {}]   ;;  %s457_s4 = inlined_call_operand.vmem [shape: f32[1,32], index: 4, kind: input, shape index: {}]   ;;  %s458_s5 = inlined_call_operand.vmem [shape: f32[32,1], index: 5, kind: input, shape index: {}]   ;;  %s459_s6 = inlined_call_operand.<no memory space> [shape: f32[1,1], index: 6, kind: input, shape index: {}]   ;;  %s460_s7 = inlined_call_operand.hbm [shape: f32[1,8], index: 7, kind: output, shape index: {}]  }
   0x1   :  { %v12_v0 = vstv %s459_s6 }
   0x2   :  { %13 = vst [vmem:[#allocation2] sm:$0x1] %v12_v0 }
   0x3   :  { %v325_v1 = vld [vmem:[%s454_s1] sm:$0xff]   ;;  %v358_v2 = vmov 0.0   ;;  %vm47_vm0 = vcmask 130048   ;;  %vm359_vm1 = vmmov 0   ;;  %v327_v6 = vld [vmem:[%s456_s3 + $0x8] sm:$0xff]  }
   0x4   :  { %301 = vmatprep.subr.bf16.mxu0 %v358_v2  ;;  %v30_v3 = vld [vmem:[%s453_s0] sm:$0xff]  ;;  %307 = vmatprep.subr.bf16.mxu1 %v358_v2 }
   0x5   :  { %v326_v4 = vld [vmem:[%s456_s3] sm:$0xff]   ;;  %302 = vmatpush3.bf16.msra.mxu0 %v325_v1  ;;  %303 = vmatprep.mubr.msk.bf16.mxu0 %vm359_vm1, %v358_v2  ;;  %v31_v5 = vpack.c.bf16 %v30_v3, %v30_v3 }
   0x6   :  { %308 = vmatpush3.bf16.msra.mxu1 %v326_v4  ;;  %315 = vmatprep.mubr.msk.bf16.mxu1 %vm359_vm1, %v358_v2 }
   0x7   :  { %309 = vmatprep.subr.bf16.mxu1 %v358_v2 }
   0x8   :  { %304 = vmatmul.mubr.msk.bf16.vlgmr.msra.gmra.mrb[0].mxu0 %vm47_vm0, %v31_v5 }
   0x9   :  { %14 = vsyncpa [#allocation4], 0  ;;  %v328_v7 = vld [vmem:[%s456_s3 + $0x10] sm:$0xff]   ;;  %v329_v8 = vld [vmem:[%s456_s3 + $0x18] sm:$0xff]   ;;  %v360_v10 = vmov 0   ;;  %vm132_vm2 = vcmask 523264   ;;  %v257_v48 = vlaneseq }
   0xa   :  { %310 = vmatpush3.bf16.msra.mxu1 %v327_v6  ;;  %v211_v9 = vld [vmem:[%s458_s5 + $0x10] sm:$0xff]  ;;  %324 = vset.pattern.permute.xlu1 %v360_v10  ;;  %v212_v11 = vld [vmem:[%s458_s5 + $0x18] sm:$0xff]  ;;  %v284_v12 = vld [vmem:[%s455_s2] ss:$0 sm:$0xff]  ;;  %vm237_vm3 = vcmask 64512   ;;  %vm268_vm4 = vcmask 57344  }
   0xb   :  { %311 = vmatprep.subr.bf16.mxu1 %v358_v2  ;;  %323 = vset.pattern.permute.xlu0 %v360_v10  ;;  %v209_v20 = vld [vmem:[%s458_s5] sm:$0xff]  ;;  %v210_v21 = vld [vmem:[%s458_s5 + $0x8] sm:$0xff]  ;;  %v258_v51 = vshrl.u32 %v257_v48, 7 }
   0xc   :  { %225 = vperm.xlu1 %324, %v211_v9   ;;  %215 = vperm.xlu0 %323, %v209_v20   ;;  %v251_v22 = vld [vmem:[#allocation2] sm:$0x1] }
   0xd   :  { %v287_v23 = vld [vmem:[%s457_s4] ss:$0 sm:$0xff]  ;;  %v259_v54 = vsub.s32 0, %v258_v51  ;;  %s361_s4 = smov [#allocation3]  }
   0xe   :  { %312 = vmatpush3.bf16.msra.mxu1 %v328_v7  ;;  %s276_s5 = sshll.u32 %s361_s4, 4  ;;  %s277_s5 = int_to_ptr.vmem [resolvable:$true] %s276_s5 }
   0xf   :  { %313 = vmatprep.subr.bf16.mxu1 %v358_v2  ;;  %s334_s22 = scalar_lea.vmem %s277_s5, 16  ;;  %s338_s23 = scalar_lea.vmem %s277_s5, 32 }
  0x10   :  { %230 = vperm.xlu1 %324, %v212_v11   ;;  %220 = vperm.xlu0 %323, %v210_v21   ;;  %p335_p0 = scmp.ne.s32.totalorder %s277_s5, %s334_s22  ;;  %p339_p1 = scmp.lt.s32.totalorder %s277_s5, %s277_s5 }
  0x11   :  { %p340_p2 = scmp.lt.s32.totalorder %s338_s23, %s334_s22 }
  0x12   :  { %314 = vmatpush3.bf16.msra.mxu1 %v329_v8 }
  0x13   :  { %p341_p3 = por %p340_p2, %p339_p1 }
  0x14   :  { %254 = vperm.xlu0 %323, %v251_v22  }
  0x15   :  { %p342_p4 = pnand %p341_p3, %p335_p0 }
  0x8b   :  { %v226_v30 = vpop.permute.xlu1 %225  ;;  %v216_v32 = vpop.permute.xlu0 %215 }
  0x8f   :  { %v231_v31 = vpop.permute.xlu1 %230  ;;  %v221_v34 = vpop.permute.xlu0 %220 }
  0x93   :  { %v255_v56 = vpop.permute.xlu0 %254 }
  0x94   :  { %v260_v58 = vrot.slane %v255_v56, %v259_v54 }
  0xdb   :  { %v85_v13 = vpop.f32.mrb[0].mxu0 }
  0xdc   :  { %v86_v14 = vadd.f32 %v284_v12, %v85_v13  ;;  %v305_v15 = vpop.f32.mrb[1].mxu0 }
  0xdd   :  { %v88_v16 = vpop.f32.mrb[2].mxu0 }
  0xde   :  { %v91_v17 = vmax.f32 %v86_v14, 0.0  ;;  %v306_v18 = vpop.f32.mrb[3].mxu0 }
  0xe0   :  { %v92_v19 = vpack.c.bf16 %v91_v17, %v91_v17 }
  0xe2   :  { %316 = vmatmul.mubr.msk.bf16.vlgmr.msra.gmra.mrb[0].mxu1 %vm132_vm2, %v92_v19 }
 0x1b5   :  { %v170_v24 = vpop.f32.mrb[0].mxu1 }
 0x1b6   :  { %v171_v25 = vadd.f32 %v287_v23, %v170_v24  ;;  %v317_v26 = vpop.f32.mrb[1].mxu1 }
 0x1b7   :  { %v173_v27 = vpop.f32.mrb[2].mxu1 }
 0x1b8   :  { %v176_v28 = vmax.f32 %v171_v25, 0.0  ;;  %v318_v29 = vpop.f32.mrb[3].mxu1 }
 0x1ba   :  { %177 = vxpose.xlu1.b32.start.end [1/1] (short) (narrow) %v176_v28, 32 }
 0x23a   :  { %v193_v33 = vpop.trf.xlu1 }
 0x23b   :  { %v233_v37 = vmul.f32 %v216_v32, %v193_v33 }
 0x23d   :  { %v238_v41 = vsel %vm237_vm3, %v233_v37, 0.0 }
 0x23e   :  { %v194_v35 = vpop.trf.xlu1 }
 0x23f   :  { %v234_v36 = vmul.f32 %v221_v34, %v194_v35 }
 0x241   :  { %v239_v39 = vsel %vm237_vm3, %v234_v36, 0.0 }
 0x242   :  { %v195_v38 = vpop.trf.xlu1  ;;  %v240_v43 = vadd.f32 %v239_v39, %v238_v41 }
 0x243   :  { %v235_v40 = vmul.f32 %v226_v30, %v195_v38 }
 0x245   :  { %v241_v42 = vsel %vm237_vm3, %v235_v40, 0.0 }
 0x246   :  { %v196_v44 = vpop.trf.xlu1  ;;  %v242_v46 = vadd.f32 %v241_v42, %v240_v43 }
 0x247   :  { %v236_v45 = vmul.f32 %v231_v31, %v196_v44 }
 0x249   :  { %v243_v47 = vsel %vm237_vm3, %v236_v45, 0.0 }
 0x24a   :  { %v244_v49 = vadd.f32 %v243_v47, %v242_v46 }
 0x24c   :  { %v245_v50 = vrot.slane %v244_v49, 4 }
 0x24e   :  { %v246_v52 = vadd.f32 %v245_v50, %v244_v49 }
 0x250   :  { %v247_v53 = vrot.slane %v246_v52, 2 }
 0x252   :  { %v248_v55 = vadd.f32 %v247_v53, %v246_v52 }
 0x254   :  { %v249_v57 = vrot.slane %v248_v55, 1 }
 0x256   :  { %v250_v59 = vadd.f32 %v249_v57, %v248_v55 }
 0x258   :  { %v261_v60 = vadd.f32 %v260_v58, %v250_v59 }
 0x25a   :  { %v293_v61 = vmul.f32 -1.442695, %v261_v60 }
 0x25c   :  { %330 = vpow2.f32 %v293_v61 }
 0x266   :  { %v331_v62 = vpop.eup %330 }
 0x267   :  { %v265_v63 = vadd.f32 1.0, %v331_v62 }
 0x269   :  { %332 = vrcp.f32 %v265_v63 }
 0x273   :  { %v333_v0 = vpop.eup %332 }
 0x274   :  { %269 = vst.msk [vmem:[#allocation3] sm:$0x1] %vm268_vm4, %v333_v0 }
 0x275   :  { %345 = shalt.err (!%p342_p4)
}
 0x276   :  { %s346_s26 = scalar_lea.hbm %s460_s7, 16 }
 0x277   :  { %p347_p5 = scmp.ne.s32.totalorder %s460_s7, %s346_s26  ;;  %p350_p6 = scmp.lt.u32.totalorder %s346_s26, %s460_s7 }
 0x279   :  { %p352_p7 = pnand %p350_p6, %p347_p5 }
 0x27b   :  { %355 = shalt.err (!%p352_p7)
}
 0x27c   :  { %279 = dma.vmem_to_hbm [thread:$0]  %s277_s5, 16, %s460_s7, [#allocation4]  }
 0x27d   :  { %356 = dma.done.wait [#allocation4], 16  }
 0x27e   :  { %357 = vsyncadd [#allocation4], 4294967280 }
 0x27f   :  { %283 = vsyncpa [#allocation4], 1 }

</bundles_post_ra>
